<compile_context>
chip_gen: v6e
topology: v6e:2x2x1
jax: 0.10.0
libtpu: 0.0.40
codegen_flags: <defaults>
</compile_context>

<pallas_src>
import functools

import jax
import jax.numpy as jnp
import numpy as np
from jax import lax
from jax.experimental import pallas as pl
from jax.experimental.pallas import tpu as pltpu

_LANE = 128


def _round_up(x, m):
    return ((x + m - 1) // m) * m


def _pick_tile(n, cap, align=1):
    """Largest t <= min(n, cap) with n % t == 0 and (t % align == 0 or t == n)."""
    cap = max(1, min(n, cap))
    for t in range(cap, 0, -1):
        if n % t == 0 and (t % align == 0 or t == n):
            return t
    return n  # full extent (always legal w.r.t. the (8,128) rule)


def _modulate_mlp_kernel(
    x_ref,      # (NB, TP, C_in)     input features
    w_ref,      # (NB, 1, W_DIM)     latents
    ws_ref,     # (W_DIM, C_in)      style dense weight, pre-scaled, pre-transposed
    sb_ref,     # (1, C_in)          style dense bias, pre-scaled
    cw_ref,     # (C_in, C_out_p)    1x1 conv weight, pre-transposed
    cwsq_ref,   # (C_in, C_out_p)    conv weight squared (host precomputed)
    cb_ref,     # (1, C_out_p)       conv bias, pre-scaled by lr_mul * gain
    o_ref,      # (NB, TP, C_out_p)
    *,
    eps,
    gain,
    lrelu_alpha,
    clamp,
    demodulate,
    add_bias,
    matmul_in_dtype,
):
    nb, tp, cin = x_ref.shape
    cout = o_ref.shape[-1]

    # --- affine style projection (DenseLayer, linear activation); scales folded on host ---
    latent = w_ref[...].reshape(nb, -1)                                   # (NB, W_DIM)
    style = jnp.dot(latent, ws_ref[...],
                    preferred_element_type=jnp.float32) + sb_ref[...]     # (NB, C_in)

    # --- modulate input; 1x1 conv == one big matmul over channels (batch folded into M) ---
    xm = x_ref[...] * style[:, None, :]                                   # (NB, TP, C_in)
    cw = cw_ref[...]
    lhs = xm.reshape(nb * tp, cin)                                        # layout-preserving
    if matmul_in_dtype is not None:
        lhs = lhs.astype(matmul_in_dtype)
        cw = cw.astype(matmul_in_dtype)
    y = jnp.dot(lhs, cw, preferred_element_type=jnp.float32).reshape(nb, tp, cout)

    # --- demodulation: rsqrt(sum_c (W[o,c]*style[c])^2 + eps); act gain folded in ---
    if demodulate:
        scale = lax.rsqrt(
            jnp.dot(style * style, cwsq_ref[...],
                    preferred_element_type=jnp.float32) + eps) * gain     # (NB, C_out_p)
        y = y * scale[:, None, :]
    elif gain != 1.0:
        y = y * gain

    # --- fused bias_act epilogue: bias (pre-scaled by gain), lrelu, clamp ---
    if add_bias:
        y = y + cb_ref[...]
    if lrelu_alpha is not None:
        y = jnp.where(y >= 0.0, y, y * lrelu_alpha)
    if clamp is not None:
        y = jnp.clip(y, -clamp, clamp)

    o_ref[...] = y.astype(o_ref.dtype)


def modulate_mlp(
    x,              # (N, P, C_in) float32
    w,              # (N, W_DIM)   float32
    style_weight_t, # (W_DIM, C_in)
    style_bias,     # (C_in,)
    conv_weight_t,  # (C_in, C_out)
    conv_bias,      # (C_out,)
    *,
    demodulate=True,
    add_bias=True,
    use_wscale=True,
    wscale_gain=1.0,
    lr_mul=1.0,
    activation_type="lrelu",
    conv_clamp=256.0,
    runtime_gain=1.0,
    eps=1e-8,
    matmul_in_dtype=None,   # e.g. jnp.bfloat16 to trade numerics for MXU rate (off by default)
):
    N, P, C_in = x.shape
    W_DIM = w.shape[1]
    C_out = conv_weight_t.shape[1]

    # ---- DenseLayer (style) scaling ----
    s_wscale = (wscale_gain / np.sqrt(W_DIM) * lr_mul) if use_wscale else lr_mul
    s_bscale = lr_mul

    # Conv weight scaling: in the demodulated fp32 path the raw weight is used (matches
    # the module's forward); in the non-demodulated path wscale is folded into the style.
    conv_wscale = (wscale_gain / np.sqrt(C_in)) * lr_mul if use_wscale else lr_mul
    style_extra_scale = 1.0 if demodulate else conv_wscale

    # ---- activation config (bias_act semantics: y = clamp(act(x + b) * gain)) ----
    if activation_type == "linear":
        gain = 1.0
        lrelu_alpha = None
        clamp = conv_clamp
    elif activation_type == "lrelu":
        gain = np.sqrt(2.0) * runtime_gain
        lrelu_alpha = 0.2
        clamp = None if conv_clamp is None else conv_clamp * runtime_gain
    else:
        raise NotImplementedError(activation_type)
    # TODO(synk): other bias_act activation types (relu/tanh/sigmoid/...) not wired up.

    # ---- host-side constant folding (grid-invariant work hoisted out of the kernel) ----
    ws_pre = style_weight_t.astype(jnp.float32) * (s_wscale * style_extra_scale)
    sb_pre = style_bias.astype(jnp.float32) * (s_bscale * style_extra_scale)
    if add_bias:
        cb_pre = conv_bias.astype(jnp.float32) * (lr_mul * gain)  # act gain folded into bias
    else:
        cb_pre = jnp.zeros((C_out,), jnp.float32)

    # ---- pad only the OUTPUT channel dim to a lane multiple (lane-dense stores).
    #      x / C_in stay unpadded: full-extent blocks are legal and we avoid an extra
    #      HBM pass over the activations. ----
    C_out_p = _round_up(C_out, _LANE)
    cw_p = conv_weight_t.astype(jnp.float32)
    if C_out_p != C_out:
        cw_p = jnp.pad(cw_p, ((0, 0), (0, C_out_p - C_out)))
        cb_pre = jnp.pad(cb_pre, ((0, C_out_p - C_out),))
    cw_sq = cw_p * cw_p                                     # hoisted out of the kernel
    sb2 = sb_pre.reshape(1, C_in)
    cb2 = cb_pre.reshape(1, C_out_p)
    w3 = w.reshape(N, 1, W_DIM)

    # ---- tile sizing: double-buffered x + out tiles within a conservative ~8 MiB budget ----
    bytes_per_row = 4 * (C_in + C_out_p)                    # one row of x + one row of out (f32)
    row_cap = max(8, (8 << 20) // (2 * bytes_per_row))      # 2x for double buffering
    TP = _pick_tile(P, row_cap, align=8)                    # sublane-aligned P tile
    NB = _pick_tile(N, max(1, row_cap // TP), align=1)      # batch folded into the MXU M dim
    grid = (N // NB, P // TP)

    kernel = functools.partial(
        _modulate_mlp_kernel,
        eps=float(eps),
        gain=float(gain),
        lrelu_alpha=lrelu_alpha,
        clamp=clamp,
        demodulate=demodulate,
        add_bias=add_bias,
        matmul_in_dtype=matmul_in_dtype,
    )

    # Advisory cost hint for the XLA scheduler.
    flops = 2 * N * P * C_in * C_out_p + 2 * N * (W_DIM + C_out_p) * C_in
    bytes_accessed = 4 * (N * P * C_in + N * P * C_out_p + N * W_DIM
                          + 2 * C_in * C_out_p + W_DIM * C_in + C_in + C_out_p)
    cost = pl.CostEstimate(flops=int(flops),
                           transcendentals=int(N * C_out_p if demodulate else 0),
                           bytes_accessed=int(bytes_accessed))

    out = pl.pallas_call(
        kernel,
        out_shape=jax.ShapeDtypeStruct((N, P, C_out_p), x.dtype),
        grid_spec=pltpu.PrefetchScalarGridSpec(
            num_scalar_prefetch=0,
            grid=grid,
            in_specs=[
                pl.BlockSpec((NB, TP, C_in), lambda n, p: (n, p, 0)),     # x (streamed)
                pl.BlockSpec((NB, 1, W_DIM), lambda n, p: (n, 0, 0)),     # latent
                pl.BlockSpec((W_DIM, C_in), lambda n, p: (0, 0)),         # style weight (resident)
                pl.BlockSpec((1, C_in), lambda n, p: (0, 0)),             # style bias
                pl.BlockSpec((C_in, C_out_p), lambda n, p: (0, 0)),       # conv weight
                pl.BlockSpec((C_in, C_out_p), lambda n, p: (0, 0)),       # conv weight^2
                pl.BlockSpec((1, C_out_p), lambda n, p: (0, 0)),          # conv bias
            ],
            out_specs=pl.BlockSpec((NB, TP, C_out_p), lambda n, p: (n, p, 0)),
        ),
        compiler_params=pltpu.CompilerParams(
            dimension_semantics=("parallel", "parallel")),
        cost_estimate=cost,
    )(x, w3, ws_pre, sb2, cw_p, cw_sq, cb2)

    if C_out_p != C_out:
        out = out[..., :C_out]
    return out


def _reference(x, w, style_weight_t, style_bias, conv_weight_t, conv_bias, **cfg):
    """Pure-JAX reference mirroring the PyTorch fp32/demodulate/non-fused path."""
    W_DIM = w.shape[1]
    C_in = x.shape[2]
    use_wscale = cfg["use_wscale"]
    wscale_gain = cfg["wscale_gain"]
    lr_mul = cfg["lr_mul"]
    s_wscale = (wscale_gain / np.sqrt(W_DIM) * lr_mul) if use_wscale else lr_mul
    conv_wscale = (wscale_gain / np.sqrt(C_in)) * lr_mul if use_wscale else lr_mul

    style = w @ style_weight_t * s_wscale + style_bias[None, :] * lr_mul   # (N, C_in)
    if not cfg["demodulate"]:
        style = style * conv_wscale
    xm = x * style[:, None, :]
    y = jnp.einsum("npc,co->npo", xm, conv_weight_t)
    if cfg["demodulate"]:
        decoef = jax.lax.rsqrt((style**2) @ (conv_weight_t**2) + cfg["eps"])
        y = y * decoef[:, None, :]
    if cfg["add_bias"]:
        y = y + conv_bias[None, None, :] * lr_mul
    if cfg["activation_type"] == "lrelu":
        y = jnp.where(y >= 0, y, 0.2 * y) * (np.sqrt(2.0) * cfg["runtime_gain"])
        if cfg["conv_clamp"] is not None:
            c = cfg["conv_clamp"] * cfg["runtime_gain"]
            y = jnp.clip(y, -c, c)
    else:
        if cfg["conv_clamp"] is not None:
            y = jnp.clip(y, -cfg["conv_clamp"], cfg["conv_clamp"])
    return y


if __name__ == "__main__":
    # Small shapes consistent with the module's forward (x.ndim == 3, w.ndim == 2).
    N, P, C_in, C_out, W_DIM = 2, 16, 4, 8, 32

    key = jax.random.PRNGKey(0)
    kx, kw, ksw, kcw, kcb = jax.random.split(key, 5)

    x = jax.random.normal(kx, (N, P, C_in), dtype=jnp.float32)
    w = jax.random.normal(kw, (N, W_DIM), dtype=jnp.float32)

    # Deterministic parameter init (matching the module's parameter shapes):
    #   style DenseLayer: weight (C_in, W_DIM) ~ randn, bias init 1.0
    #   conv: weight (C_out, C_in, 1, 1) ~ randn, bias (use small randn here).
    style_weight = jax.random.normal(ksw, (C_in, W_DIM), dtype=jnp.float32)
    style_bias = jnp.ones((C_in,), dtype=jnp.float32)
    conv_weight = jax.random.normal(kcw, (C_out, C_in), dtype=jnp.float32)
    conv_bias = 0.1 * jax.random.normal(kcb, (C_out,), dtype=jnp.float32)

    style_weight_t = style_weight.T          # (W_DIM, C_in)
    conv_weight_t = conv_weight.T            # (C_in, C_out)

    cfg = dict(
        demodulate=True,
        add_bias=True,
        use_wscale=True,
        wscale_gain=1.0,
        lr_mul=1.0,
        activation_type="lrelu",
        conv_clamp=256.0,
        runtime_gain=1.0,
        eps=1e-8,
    )

    out = modulate_mlp(x, w, style_weight_t, style_bias, conv_weight_t, conv_bias, **cfg)
    out = jax.block_until_ready(out)

    ref = _reference(x, w, style_weight_t, style_bias, conv_weight_t, conv_bias, **cfg)
    np.testing.assert_allclose(np.asarray(out), np.asarray(ref), rtol=1e-5, atol=1e-5)

    print("KERNEL_OK")
</pallas_src>

<mosaic_0001>
module attributes {stable_mosaic.version = 11 : i64} {
  func.func @_modulate_mlp_kernel(%arg0: i32, %arg1: i32, %arg2: memref<2x16x4xf32, #tpu.memory_space<vmem>>, %arg3: memref<2x1x32xf32, #tpu.memory_space<vmem>>, %arg4: memref<32x4xf32, #tpu.memory_space<vmem>>, %arg5: memref<1x4xf32, #tpu.memory_space<vmem>>, %arg6: memref<4x128xf32, #tpu.memory_space<vmem>>, %arg7: memref<4x128xf32, #tpu.memory_space<vmem>>, %arg8: memref<1x128xf32, #tpu.memory_space<vmem>>, %arg9: memref<2x16x128xf32, #tpu.memory_space<vmem>>) attributes {dimension_semantics = [#tpu.dimension_semantics<parallel>, #tpu.dimension_semantics<parallel>], iteration_bounds = array<i64: 1, 1>, scalar_prefetch = 0 : i64, scratch_operands = 0 : i64, tpu.core_type = #tpu.core_type<tc>, window_params = [{transform_indices = @transform_0, window_bounds = array<i64: 2, 16, 4>}, {transform_indices = @transform_1, window_bounds = array<i64: 2, 1, 32>}, {pipeline_mode = #tpu.pipeline_mode<synchronous>, transform_indices = @transform_2, window_bounds = array<i64: 32, 4>}, {pipeline_mode = #tpu.pipeline_mode<synchronous>, transform_indices = @transform_3, window_bounds = array<i64: 1, 4>}, {pipeline_mode = #tpu.pipeline_mode<synchronous>, transform_indices = @transform_4, window_bounds = array<i64: 4, 128>}, {pipeline_mode = #tpu.pipeline_mode<synchronous>, transform_indices = @transform_5, window_bounds = array<i64: 4, 128>}, {pipeline_mode = #tpu.pipeline_mode<synchronous>, transform_indices = @transform_6, window_bounds = array<i64: 1, 128>}, {transform_indices = @transform_7, window_bounds = array<i64: 2, 16, 128>}]} {
    %c0 = arith.constant 0 : index
    %c0_0 = arith.constant 0 : index
    %c0_1 = arith.constant 0 : index
    %0 = vector.load %arg3[%c0, %c0_0, %c0_1] : memref<2x1x32xf32, #tpu.memory_space<vmem>>, vector<2x1x32xf32>
    %1 = vector.shape_cast %0 : vector<2x1x32xf32> to vector<2x32xf32>
    %c0_2 = arith.constant 0 : index
    %c0_3 = arith.constant 0 : index
    %2 = vector.load %arg4[%c0_2, %c0_3] : memref<32x4xf32, #tpu.memory_space<vmem>>, vector<32x4xf32>
    %cst = arith.constant dense<0.000000e+00> : vector<2x4xf32>
    %3 = tpu.matmul %1, %2, %cst {dimension_numbers = #tpu.dot_dimension_numbers<[1], [0], [0], [1], [0, 0, 1, 1], [], []>} : vector<2x32xf32>, vector<32x4xf32>, vector<2x4xf32> -> vector<2x4xf32>
    %c0_4 = arith.constant 0 : index
    %c0_5 = arith.constant 0 : index
    %4 = vector.load %arg5[%c0_4, %c0_5] : memref<1x4xf32, #tpu.memory_space<vmem>>, vector<1x4xf32>
    %5 = vector.broadcast %4 : vector<1x4xf32> to vector<2x4xf32>
    %6 = arith.addf %3, %5 : vector<2x4xf32>
    %c0_6 = arith.constant 0 : index
    %c0_7 = arith.constant 0 : index
    %c0_8 = arith.constant 0 : index
    %7 = vector.load %arg2[%c0_6, %c0_7, %c0_8] : memref<2x16x4xf32, #tpu.memory_space<vmem>>, vector<2x16x4xf32>
    %8 = vector.shape_cast %6 : vector<2x4xf32> to vector<2x1x4xf32>
    %9 = vector.broadcast %8 : vector<2x1x4xf32> to vector<2x16x4xf32>
    %10 = arith.mulf %7, %9 : vector<2x16x4xf32>
    %c0_9 = arith.constant 0 : index
    %c0_10 = arith.constant 0 : index
    %11 = vector.load %arg6[%c0_9, %c0_10] : memref<4x128xf32, #tpu.memory_space<vmem>>, vector<4x128xf32>
    %12 = vector.shape_cast %10 : vector<2x16x4xf32> to vector<32x4xf32>
    %cst_11 = arith.constant dense<0.000000e+00> : vector<32x128xf32>
    %13 = tpu.matmul %12, %11, %cst_11 {dimension_numbers = #tpu.dot_dimension_numbers<[1], [0], [0], [1], [0, 0, 1, 1], [], []>} : vector<32x4xf32>, vector<4x128xf32>, vector<32x128xf32> -> vector<32x128xf32>
    %14 = vector.shape_cast %13 : vector<32x128xf32> to vector<2x16x128xf32>
    %15 = arith.mulf %6, %6 : vector<2x4xf32>
    %c0_12 = arith.constant 0 : index
    %c0_13 = arith.constant 0 : index
    %16 = vector.load %arg7[%c0_12, %c0_13] : memref<4x128xf32, #tpu.memory_space<vmem>>, vector<4x128xf32>
    %cst_14 = arith.constant dense<0.000000e+00> : vector<2x128xf32>
    %17 = tpu.matmul %15, %16, %cst_14 {dimension_numbers = #tpu.dot_dimension_numbers<[1], [0], [0], [1], [0, 0, 1, 1], [], []>} : vector<2x4xf32>, vector<4x128xf32>, vector<2x128xf32> -> vector<2x128xf32>
    %cst_15 = arith.constant 9.99999993E-9 : f32
    %18 = vector.broadcast %cst_15 : f32 to vector<2x128xf32>
    %19 = arith.addf %17, %18 : vector<2x128xf32>
    %20 = math.rsqrt %19 : vector<2x128xf32>
    %cst_16 = arith.constant 1.41421354 : f32
    %21 = vector.broadcast %cst_16 : f32 to vector<2x128xf32>
    %22 = arith.mulf %20, %21 : vector<2x128xf32>
    %23 = vector.shape_cast %22 : vector<2x128xf32> to vector<2x1x128xf32>
    %24 = vector.broadcast %23 : vector<2x1x128xf32> to vector<2x16x128xf32>
    %25 = arith.mulf %14, %24 : vector<2x16x128xf32>
    %c0_17 = arith.constant 0 : index
    %c0_18 = arith.constant 0 : index
    %26 = vector.load %arg8[%c0_17, %c0_18] : memref<1x128xf32, #tpu.memory_space<vmem>>, vector<1x128xf32>
    %27 = vector.shape_cast %26 : vector<1x128xf32> to vector<1x1x128xf32>
    %28 = vector.broadcast %27 : vector<1x1x128xf32> to vector<2x16x128xf32>
    %29 = arith.addf %25, %28 : vector<2x16x128xf32>
    %cst_19 = arith.constant 0.000000e+00 : f32
    %30 = vector.broadcast %cst_19 : f32 to vector<2x16x128xf32>
    %31 = arith.cmpf oge, %29, %30 : vector<2x16x128xf32>
    %cst_20 = arith.constant 2.000000e-01 : f32
    %32 = vector.broadcast %cst_20 : f32 to vector<2x16x128xf32>
    %33 = arith.mulf %29, %32 : vector<2x16x128xf32>
    %34 = arith.select %31, %29, %33 : vector<2x16x128xi1>, vector<2x16x128xf32>
    %cst_21 = arith.constant -2.560000e+02 : f32
    %cst_22 = arith.constant 2.560000e+02 : f32
    %35 = vector.broadcast %cst_21 : f32 to vector<2x16x128xf32>
    %36 = arith.maximumf %35, %34 : vector<2x16x128xf32>
    %37 = vector.broadcast %cst_22 : f32 to vector<2x16x128xf32>
    %38 = arith.minimumf %37, %36 : vector<2x16x128xf32>
    %c0_23 = arith.constant 0 : index
    %c0_24 = arith.constant 0 : index
    %c0_25 = arith.constant 0 : index
    %39 = vector.load %arg9[%c0_23, %c0_24, %c0_25] : memref<2x16x128xf32, #tpu.memory_space<vmem>>, vector<2x16x128xf32>
    tpu.vector_store %arg9[%c0_23, %c0_24, %c0_25], %38 {strides = array<i32>} : memref<2x16x128xf32, #tpu.memory_space<vmem>>, vector<2x16x128xf32>,
    return
  }
  func.func @transform_0(%arg0: i32, %arg1: i32) -> (i32, i32, i32) {
    %c0_i32 = arith.constant 0 : i32
    %c0_i32_0 = arith.constant 0 : i32
    return %arg0, %arg1, %c0_i32 : i32, i32, i32
  }
  func.func @transform_1(%arg0: i32, %arg1: i32) -> (i32, i32, i32) {
    %c0_i32 = arith.constant 0 : i32
    %c0_i32_0 = arith.constant 0 : i32
    %c0_i32_1 = arith.constant 0 : i32
    return %arg0, %c0_i32, %c0_i32_0 : i32, i32, i32
  }
  func.func @transform_2(%arg0: i32, %arg1: i32) -> (i32, i32) {
    %c0_i32 = arith.constant 0 : i32
    %c0_i32_0 = arith.constant 0 : i32
    %c0_i32_1 = arith.constant 0 : i32
    return %c0_i32, %c0_i32_0 : i32, i32
  }
  func.func @transform_3(%arg0: i32, %arg1: i32) -> (i32, i32) {
    %c0_i32 = arith.constant 0 : i32
    %c0_i32_0 = arith.constant 0 : i32
    %c0_i32_1 = arith.constant 0 : i32
    return %c0_i32, %c0_i32_0 : i32, i32
  }
  func.func @transform_4(%arg0: i32, %arg1: i32) -> (i32, i32) {
    %c0_i32 = arith.constant 0 : i32
    %c0_i32_0 = arith.constant 0 : i32
    %c0_i32_1 = arith.constant 0 : i32
    return %c0_i32, %c0_i32_0 : i32, i32
  }
  func.func @transform_5(%arg0: i32, %arg1: i32) -> (i32, i32) {
    %c0_i32 = arith.constant 0 : i32
    %c0_i32_0 = arith.constant 0 : i32
    %c0_i32_1 = arith.constant 0 : i32
    return %c0_i32, %c0_i32_0 : i32, i32
  }
  func.func @transform_6(%arg0: i32, %arg1: i32) -> (i32, i32) {
    %c0_i32 = arith.constant 0 : i32
    %c0_i32_0 = arith.constant 0 : i32
    %c0_i32_1 = arith.constant 0 : i32
    return %c0_i32, %c0_i32_0 : i32, i32
  }
  func.func @transform_7(%arg0: i32, %arg1: i32) -> (i32, i32, i32) {
    %c0_i32 = arith.constant 0 : i32
    %c0_i32_0 = arith.constant 0 : i32
    return %arg0, %arg1, %c0_i32 : i32, i32, i32
  }
}

</mosaic_0001>

<bundles_post_ra>
// kernel: tpu_custom_call.1
= control target key start
LH: loop header
LB: loop body
LE: loop exit
PB: predicated region body
PF: predicated region fallthrough
CT: control target
= control target key end

     0   :  { %v46_v1 = vlaneseq  ;;  %v522_v2 = vmov 0.0   ;;  %vm523_vm0 = vmmov 0   ;;  %v524_v7 = vmov 1966171168   ;;  %s623_s0 = inlined_call_operand.vmem [shape: f32[2,16,4], index: 0, kind: input, shape index: {}]   ;;  %s624_s1 = inlined_call_operand.vmem [shape: f32[2,1,32], index: 1, kind: input, shape index: {}]   ;;  %s625_s2 = inlined_call_operand.vmem [shape: f32[32,4], index: 2, kind: input, shape index: {}]   ;;  %s626_s3 = inlined_call_operand.vmem [shape: f32[1,4], index: 3, kind: input, shape index: {}]   ;;  %s627_s4 = inlined_call_operand.vmem [shape: f32[4,128], index: 4, kind: input, shape index: {}]   ;;  %s628_s5 = inlined_call_operand.vmem [shape: f32[4,128], index: 5, kind: input, shape index: {}]   ;;  %s629_s6 = inlined_call_operand.vmem [shape: f32[1,128], index: 6, kind: input, shape index: {}]   ;;  %s630_s7 = inlined_call_operand.hbm [shape: f32[2,16,128], index: 7, kind: output, shape index: {}]  }
   0x1   :  { %v32_v0 = vld [vmem:[%s625_s2 + $0x18] sm:$0xff]  ;;  %468 = vmatprep.subr.mxu0 %v522_v2  ;;  %v31_v3 = vld [vmem:[%s625_s2 + $0x10] sm:$0xff]  ;;  %476 = vmatprep.mubr.msk.f32.mxu0 %vm523_vm0, %v522_v2  ;;  %v27_v4 = vld [vmem:[%s624_s1] sm:$0x1]  ;;  %v44_v8 = vunpack.c.l.s4 %v524_v7 }
   0x2   :  { %469 = vmatpush3.msra.mxu0 %v32_v0  ;;  %v28_v5 = vld [vmem:[%s624_s1 + $0x1] sm:$0x1]  ;;  %v30_v6 = vld [vmem:[%s625_s2 + $0x8] sm:$0xff]  ;;  %v47_v9 = vshrl.u32 %v46_v1, 7 }
   0x3   :  { %470 = vmatprep.subr.mxu0 %v522_v2 }
   0x4   :  { %12 = vsyncpa [#allocation3], 0  ;;  %471 = vmatpush3.msra.mxu0 %v31_v3  ;;  %v29_v10 = vld [vmem:[%s625_s2] sm:$0xff]  ;;  %v42_v11 = vcombine.low %v27_v4, %v28_v5  ;;  %v45_v12 = vunpack.c.0.s8 %v44_v8  ;;  %vm57_vm1 = vcmask 261120   ;;  %vm185_vm2 = vcmask 1043456   ;;  %v131_v26 = vld [vmem:[%s623_s0 + $0x8] sm:$0xff] }
   0x5   :  { %472 = vmatprep.subr.mxu0 %v522_v2  ;;  %v171_v16 = vld [vmem:[%s627_s4] sm:$0xf]  ;;  %v159_v22 = vsub.s32 0, %v47_v9  ;;  %vm172_vm3 = vcmask 31744   ;;  %v132_v29 = vld [vmem:[%s623_s0 + $0x10] sm:$0xff]  ;;  %v133_v35 = vld [vmem:[%s623_s0 + $0x18] sm:$0xff] }
   0x6   :  { %473 = vmatpush3.msra.mxu0 %v30_v6  ;;  %v48_v13 = vsub.s32 %v45_v12, %v47_v9  ;;  %479 = vmatprep.subr.msk.mxu1 %vm185_vm2, %v171_v16  ;;  %v442_v17 = vld [vmem:[%s626_s3] ss:$0 sm:$0xff]  ;;  %s525_s23 = smov [#allocation2]  }
   0x7   :  { %474 = vmatprep.subr.mxu0 %v522_v2  ;;  %480 = vmatpush3.msk.msra.mxu1 %vm185_vm2, %v171_v16  ;;  %v130_v25 = vld [vmem:[%s623_s0] sm:$0xff]  ;;  %s431_s24 = sshll.u32 %s525_s23, 4  ;;  %s432_s24 = int_to_ptr.vmem [resolvable:$true] %s431_s24 }
   0x8   :  { %475 = vmatpush3.msra.mxu0 %v29_v10  ;;  %v49_v14 = vrot.slane %v42_v11, %v48_v13  ;;  %487 = vmatprep.subr.mxu1 %v522_v2  ;;  %v275_v33 = vld [vmem:[%s628_s5] sm:$0xf]  ;;  %p505_p1 = scmp.lt.s32.totalorder %s432_s24, %s432_s24 }
   0x9   :  { %v451_v52 = vld [vmem:[%s629_s6] ss:$0 sm:$0xff]  ;;  %s500_s6 = scalar_lea.vmem %s432_s24, 512 }
   0xa   :  { %v56_v15 = vrot.slane %v49_v14, %v48_v13  ;;  %p501_p0 = scmp.ne.s32.totalorder %s432_s24, %s500_s6  ;;  %p506_p2 = scmp.lt.s32.totalorder %s500_s6, %s500_s6 }
   0xc   :  { %477 = vmatmul.mubr.msk.f32.vlgmr.msra.gmra.mxu0 %vm57_vm1, %v56_v15  ;;  %p507_p3 = por %p506_p2, %p505_p1 }
   0xe   :  { %p508_p4 = pnand %p507_p3, %p501_p0 }
  0xcc   :  { %v126_v18 = vpop.f32.mrf.mxu0 }
  0xcd   :  { %v127_v19 = vadd.f32 %v442_v17, %v126_v18 }
  0xce   :  { %v478_v20 = vpop.f32.mrf.mxu0 }
  0xcf   :  { %v141_v21 = vrot.slane %v127_v19, %v48_v13  ;;  %v274_v37 = vmul.f32 %v127_v19, %v127_v19 }
  0xd1   :  { %v142_v23 = vcombine.high %v141_v21, %v141_v21  ;;  %v149_v24 = vrot.slane %v141_v21, %v48_v13 }
  0xd3   :  { %v156_v27 = vrot.slane %v142_v23, %v48_v13  ;;  %v160_v28 = vrot.slane %v149_v24, %v159_v22 }
  0xd5   :  { %v164_v30 = vrot.slane %v156_v27, %v159_v22  ;;  %v167_v31 = vmul.f32 %v160_v28, %v130_v25  ;;  %v168_v32 = vmul.f32 %v160_v28, %v131_v26 }
  0xd7   :  { %481 = vmatprep.mubr.msk.f32.mxu1 %vm172_vm3, %v167_v31  ;;  %v169_v34 = vmul.f32 %v164_v30, %v132_v29  ;;  %v170_v36 = vmul.f32 %v164_v30, %v133_v35 }
  0xd8   :  { %482 = vmatmul.mubr.msk.f32.vlgmr.msra.gmra.mxu1 %vm172_vm3, %v168_v32 }
  0xd9   :  { %488 = vmatpush3.msk.msra.mxu1 %vm185_vm2, %v275_v33  ;;  %484 = vmatprep.mubr.msk.f32.mxu1 %vm172_vm3, %v169_v34 }
  0xdc   :  { %485 = vmatmul.mubr.msk.f32.gmra.mxu1 %vm172_vm3, %v170_v36 }
  0xdd   :  { %489 = vmatprep.mubr.msk.f32.mxu1 %vm523_vm0, %v522_v2 }
  0xe0   :  { %490 = vmatmul.mubr.msk.f32.vlgmr.msra.gmra.mxu1 %vm172_vm3, %v274_v37 }
 0x198   :  { %v483_v38 = vpop.f32.mrf.mxu1 }
 0x19a   :  { %v255_v39 = vpop.f32.mrf.mxu1 }
 0x19c   :  { %v486_v40 = vpop.f32.mrf.mxu1 }
 0x19e   :  { %v265_v41 = vpop.f32.mrf.mxu1 }
 0x1a0   :  { %v348_v42 = vpop.f32.mrf.mxu1 }
 0x1a1   :  { %v349_v43 = vadd.f32 1e-08, %v348_v42 }
 0x1a2   :  { %v491_v44 = vpop.f32.mrf.mxu1 }
 0x1a3   :  { %498 = vrsqrt.f32 %v349_v43 }
 0x1b0   :  { %v499_v45 = vpop.eup %498 }
 0x1b1   :  { %v353_v46 = vmul.f32 1.4142135, %v499_v45 }
 0x1b3   :  { %v361_v47 = vrot.slane %v353_v46, %v48_v13 }
 0x1b5   :  { %v362_v48 = vcombine.high %v361_v47, %v361_v47  ;;  %v369_v49 = vrot.slane %v361_v47, %v48_v13 }
 0x1b7   :  { %v376_v50 = vrot.slane %v362_v48, %v48_v13  ;;  %v380_v51 = vrot.slane %v369_v49, %v159_v22 }
 0x1b9   :  { %v384_v53 = vrot.slane %v376_v50, %v159_v22  ;;  %v387_v54 = vmul.f32 %v380_v51, %v255_v39  ;;  %v388_v55 = vmul.f32 %v483_v38, %v380_v51 }
 0x1bb   :  { %v389_v56 = vmul.f32 %v384_v53, %v265_v41  ;;  %v390_v57 = vmul.f32 %v486_v40, %v384_v53  ;;  %v398_v58 = vadd.f32 %v451_v52, %v387_v54  ;;  %v399_v59 = vadd.f32 %v451_v52, %v388_v55 }
 0x1bd   :  { %v400_v60 = vadd.f32 %v451_v52, %v389_v56  ;;  %v401_v61 = vadd.f32 %v451_v52, %v390_v57  ;;  %v406_v62 = vmul.f32 0.2, %v398_v58  ;;  %v407_v63 = vmul.f32 0.2, %v399_v59 }
 0x1be   :  { %vm402_vm4 = vcmp.ge.f32.partialorder %v398_v58, 0.0  ;;  %vm403_vm5 = vcmp.ge.f32.partialorder %v399_v59, 0.0 }
 0x1bf   :  { %vm404_vm6 = vcmp.ge.f32.partialorder %v400_v60, 0.0  ;;  %vm405_vm7 = vcmp.ge.f32.partialorder %v401_v61, 0.0  ;;  %v408_v0 = vmul.f32 0.2, %v400_v60  ;;  %v409_v1 = vmul.f32 0.2, %v401_v61 }
 0x1c0   :  { %v410_v2 = vsel %vm402_vm4, %v398_v58, %v406_v62  ;;  %v411_v3 = vsel %vm403_vm5, %v399_v59, %v407_v63 }
 0x1c1   :  { %v412_v4 = vsel %vm404_vm6, %v400_v60, %v408_v0  ;;  %v413_v5 = vsel %vm405_vm7, %v401_v61, %v409_v1  ;;  %v452_v6 = vclamps-f32 %v410_v2, 256.0  ;;  %v453_v7 = vclamps-f32 %v411_v3, 256.0 }
 0x1c2   :  { %v454_v8 = vclamps-f32 %v412_v4, 256.0  ;;  %v455_v9 = vclamps-f32 %v413_v5, 256.0 }
 0x1c3   :  { %422 = vst [vmem:[#allocation2] sm:$0xff] %v452_v6  ;;  %423 = vst [vmem:[#allocation2 + $0x8] sm:$0xff] %v453_v7 }
 0x1c4   :  { %424 = vst [vmem:[#allocation2 + $0x10] sm:$0xff] %v454_v8  ;;  %425 = vst [vmem:[#allocation2 + $0x18] sm:$0xff] %v455_v9 }
 0x1c5   :  { %511 = shalt.err (!%p508_p4)
}
 0x1c6   :  { %s526_s25 = smov 128   ;;  %s527_s26 = smov 8  }
 0x1c7   :  { %437 = dma.vmem_to_hbm [thread:$0]  %s432_s24, 512, %s630_s7, [#allocation3], %s526_s25, %s526_s25, %s527_s26  }
 0x1c8   :  { %520 = dma.done.wait [#allocation3], 512  }
 0x1c9   :  { %521 = vsyncadd [#allocation3], 4294966784 }
 0x1ca   :  { %441 = vsyncpa [#allocation3], 1 }

</bundles_post_ra>
